<compile_context>
chip_gen: v7x
topology: tpu7x:2x2x1
jax: 0.10.0
libtpu: 0.0.40
codegen_flags: <defaults>
</compile_context>

<pallas_src>
import functools

import jax
import jax.numpy as jnp
from jax.experimental import pallas as pl
from jax.experimental.pallas import tpu as pltpu


def _conv_lrelu_kernel(p_ref, w_ref, b_ref, o_ref, *, slope):
    # p_ref: (K, Pt) bf16 ; w_ref: (Cout, K) bf16 ; b_ref: (Cout, 1) f32
    # o_ref: (Cout, Pt)
    y = jnp.dot(w_ref[...], p_ref[...], preferred_element_type=jnp.float32)
    y = y + b_ref[...]
    y = jnp.where(y > 0, y, slope * y)
    o_ref[...] = y.astype(o_ref.dtype)


def _conv_in_lrelu_kernel(p_ref, w_ref, b_ref, g_ref, beta_ref, o_ref, *scratch,
                          eps, slope, p_total, p_tile, n_p):
    # p_ref: (K, Pt) bf16 ; w_ref: (Cout, K) bf16 ; b/g/beta: (Cout, 1) f32
    # o_ref: (Cout, P) -- resident in VMEM for the whole sample (its index map
    #        ignores the P-tile grid axis).
    # scratch (only when n_p > 1): sum_ref, sq_ref -- (Cout, 1) f32 accumulators.
    y = jnp.dot(w_ref[...], p_ref[...], preferred_element_type=jnp.float32)
    y = y + b_ref[...]                                    # (Cout, Pt) f32

    if n_p == 1:
        # Whole sample in one tile: single-pass stats (sum / sum-of-squares).
        mean = jnp.mean(y, axis=1, keepdims=True)                          # (Cout, 1)
        var = jnp.maximum(jnp.mean(y * y, axis=1, keepdims=True) - mean * mean, 0.0)
        scale = jax.lax.rsqrt(var + eps) * g_ref[...]
        shift = beta_ref[...] - mean * scale
        z = y * scale + shift
        z = jnp.where(z > 0, z, slope * z)
        o_ref[...] = z.astype(o_ref.dtype)
        return

    sum_ref, sq_ref = scratch
    p_idx = pl.program_id(1)

    @pl.when(p_idx == 0)
    def _():
        sum_ref[...] = jnp.zeros_like(sum_ref)
        sq_ref[...] = jnp.zeros_like(sq_ref)

    # Single-pass per-(sample, channel) statistics accumulated across P tiles.
    sum_ref[...] += jnp.sum(y, axis=1, keepdims=True)
    sq_ref[...] += jnp.sum(y * y, axis=1, keepdims=True)

    # Stash the un-normalized conv tile into the sample-resident output block.
    start = pl.multiple_of(p_idx * p_tile, p_tile)        # p_tile is a mult. of 128 here
    o_ref[:, pl.ds(start, p_tile)] = y.astype(o_ref.dtype)

    @pl.when(p_idx == n_p - 1)
    def _():
        inv_p = 1.0 / p_total
        mean = sum_ref[...] * inv_p
        var = jnp.maximum(sq_ref[...] * inv_p - mean * mean, 0.0)
        scale = jax.lax.rsqrt(var + eps) * g_ref[...]
        shift = beta_ref[...] - mean * scale
        # Normalize the resident block tile by tile with static, lane-aligned slices.
        for i in range(n_p):
            sl = slice(i * p_tile, (i + 1) * p_tile)
            z = o_ref[:, sl].astype(jnp.float32) * scale + shift
            z = jnp.where(z > 0, z, slope * z)
            o_ref[:, sl] = z.astype(o_ref.dtype)


def _im2col(x, ks, pad, stride):
    # x: (N, C, H, W) -> patches (N, C*ks*ks, OH*OW)  [K on sublanes, P on lanes]
    N, C, H, W = x.shape
    xp = jnp.pad(x, ((0, 0), (0, 0), (pad, pad), (pad, pad)))
    OH = (H + 2 * pad - ks) // stride + 1
    OW = (W + 2 * pad - ks) // stride + 1
    ii = (jnp.arange(OH) * stride)[:, None] + jnp.arange(ks)[None, :]     # (OH, ks)
    jj = (jnp.arange(OW) * stride)[:, None] + jnp.arange(ks)[None, :]     # (OW, ks)
    # advanced indexing -> (N, C, OH, OW, ks, ks)
    patches = xp[:, :, ii[:, None, :, None], jj[None, :, None, :]]
    # K ordering (C, kh, kw) matches OIHW weight flattening; P ordering (oh, ow).
    patches = jnp.transpose(patches, (0, 1, 4, 5, 2, 3))                  # (N, C, ks, ks, OH, OW)
    patches = patches.reshape(N, C * ks * ks, OH * OW)
    return patches, OH, OW


def _pick_p_tile(p):
    # Largest lane-aligned tile that evenly divides P; otherwise whole P (single tile).
    for t in (2048, 1024, 512, 256, 128):
        if p % t == 0:
            return t
    return p


def conv_in_relu(x, weight, bias, gamma, beta, *, ks=5, pad=2, stride=2, isn=False):
    """x: (N, C, H, W) NCHW. weight: (out_c, C, ks, ks). Returns (N, out_c, OH, OW)."""
    N, C, H, W = x.shape
    out_c = weight.shape[0]
    K = C * ks * ks

    patches, OH, OW = _im2col(x, ks, pad, stride)          # (N, K, P) f32
    P = OH * OW
    p_tile = _pick_p_tile(P)
    n_p = P // p_tile

    # bf16 for the big HBM streams (patches, weights); f32 for bias / norm params,
    # f32 accumulation on the MXU, f32 elementwise epilogue (v5e has no bf16 VPU).
    patches = patches.astype(jnp.bfloat16)
    w_mat = weight.reshape(out_c, K).astype(jnp.bfloat16)
    b_col = bias.reshape(out_c, 1).astype(jnp.float32)
    g_col = gamma.reshape(out_c, 1).astype(jnp.float32)
    beta_col = beta.reshape(out_c, 1).astype(jnp.float32)

    patch_spec = pl.BlockSpec((None, K, p_tile), lambda n, p: (n, 0, p))
    w_spec = pl.BlockSpec((out_c, K), lambda n, p: (0, 0))
    vec_spec = pl.BlockSpec((out_c, 1), lambda n, p: (0, 0))

    if isn:
        kernel = functools.partial(
            _conv_in_lrelu_kernel, eps=1e-5, slope=0.01,
            p_total=float(P), p_tile=p_tile, n_p=n_p)
        in_specs = [patch_spec, w_spec, vec_spec, vec_spec, vec_spec]
        # Output block is resident per sample across all P tiles (accumulator-style).
        out_spec = pl.BlockSpec((None, out_c, P), lambda n, p: (n, 0, 0))
        scratch = ([pltpu.VMEM((out_c, 1), jnp.float32),
                    pltpu.VMEM((out_c, 1), jnp.float32)] if n_p > 1 else [])
        dim_sem = ("parallel", "arbitrary") if n_p > 1 else ("parallel", "parallel")
        args = (patches, w_mat, b_col, g_col, beta_col)
    else:
        kernel = functools.partial(_conv_lrelu_kernel, slope=0.01)
        in_specs = [patch_spec, w_spec, vec_spec]
        out_spec = pl.BlockSpec((None, out_c, p_tile), lambda n, p: (n, 0, p))
        scratch = []
        dim_sem = ("parallel", "parallel")
        args = (patches, w_mat, b_col)

    out = pl.pallas_call(
        kernel,
        out_shape=jax.ShapeDtypeStruct((N, out_c, P), x.dtype),
        grid_spec=pltpu.PrefetchScalarGridSpec(
            num_scalar_prefetch=0,
            grid=(N, n_p),
            in_specs=in_specs,
            out_specs=out_spec,
            scratch_shapes=scratch,
        ),
        compiler_params=pltpu.CompilerParams(dimension_semantics=dim_sem),
    )(*args)

    # (N, out_c, P) is already channels-first: just fold P back to (OH, OW).
    return out.reshape(N, out_c, OH, OW)


def _reference(x, weight, bias, gamma, beta, *, ks=5, pad=2, stride=2, isn=False):
    # pure-JAX f32 reference for validation
    y = jax.lax.conv_general_dilated(
        x, weight, window_strides=(stride, stride),
        padding=((pad, pad), (pad, pad)),
        dimension_numbers=("NCHW", "OIHW", "NCHW"))
    y = y + bias.reshape(1, -1, 1, 1)
    if isn:
        mean = jnp.mean(y, axis=(2, 3), keepdims=True)
        var = jnp.mean((y - mean) ** 2, axis=(2, 3), keepdims=True)
        y = (y - mean) * jax.lax.rsqrt(var + 1e-5)
        y = y * gamma.reshape(1, -1, 1, 1) + beta.reshape(1, -1, 1, 1)
    return jnp.where(y > 0, y, 0.01 * y)


if __name__ == "__main__":
    key = jax.random.PRNGKey(0)
    k1, k2, k3, k4, k5 = jax.random.split(key, 5)

    N, in_c, H, W = 2, 4, 16, 16
    out_c, ks, pad, stride = 8, 5, 2, 2

    x = jax.random.normal(k1, (N, in_c, H, W), dtype=jnp.float32)
    # Conv2d parameters (deterministic synthetic init)
    fan_in = in_c * ks * ks
    bound = 1.0 / (fan_in ** 0.5)
    weight = jax.random.uniform(k2, (out_c, in_c, ks, ks), jnp.float32, -bound, bound)
    bias = jax.random.uniform(k3, (out_c,), jnp.float32, -bound, bound)
    # InstanceNorm2d(affine=True) params (non-trivial values to exercise affine path)
    gamma = 1.0 + 0.1 * jax.random.normal(k4, (out_c,), jnp.float32)
    beta = 0.1 * jax.random.normal(k5, (out_c,), jnp.float32)

    ok = True
    for isn in (False, True):
        y = conv_in_relu(x, weight, bias, gamma, beta,
                         ks=ks, pad=pad, stride=stride, isn=isn)
        y = jax.block_until_ready(y)
        y_ref = _reference(x, weight, bias, gamma, beta,
                           ks=ks, pad=pad, stride=stride, isn=isn)
        # tolerance loosened vs f32 reference because patches/weights stream in bf16
        # (accumulation and the IN/LeakyReLU epilogue remain f32)
        ok = ok and bool(jnp.allclose(y, y_ref, atol=3e-2, rtol=3e-2))

    if ok:
        print("KERNEL_OK")
</pallas_src>

<mosaic_0001>
module attributes {stable_mosaic.version = 11 : i64} {
  func.func @_conv_lrelu_kernel(%arg0: i32, %arg1: i32, %arg2: memref<1x100x64xbf16, #tpu.memory_space<vmem>>, %arg3: memref<8x100xbf16, #tpu.memory_space<vmem>>, %arg4: memref<8x1xf32, #tpu.memory_space<vmem>>, %arg5: memref<1x8x64xf32, #tpu.memory_space<vmem>>) attributes {dimension_semantics = [#tpu.dimension_semantics<parallel>, #tpu.dimension_semantics<parallel>], iteration_bounds = array<i64: 2, 1>, scalar_prefetch = 0 : i64, scratch_operands = 0 : i64, tpu.core_type = #tpu.core_type<tc>, window_params = [{transform_indices = @transform_0, window_bounds = array<i64: 1, 100, 64>}, {pipeline_mode = #tpu.pipeline_mode<synchronous>, transform_indices = @transform_1, window_bounds = array<i64: 8, 100>}, {pipeline_mode = #tpu.pipeline_mode<synchronous>, transform_indices = @transform_2, window_bounds = array<i64: 8, 1>}, {transform_indices = @transform_3, window_bounds = array<i64: 1, 8, 64>}]} {
    %c0 = arith.constant 0 : index
    %c0_0 = arith.constant 0 : index
    %0 = vector.load %arg3[%c0, %c0_0] : memref<8x100xbf16, #tpu.memory_space<vmem>>, vector<8x100xbf16>
    %c0_1 = arith.constant 0 : index
    %c0_2 = arith.constant 0 : index
    %c0_3 = arith.constant 0 : index
    %1 = vector.load %arg2[%c0_1, %c0_2, %c0_3] : memref<1x100x64xbf16, #tpu.memory_space<vmem>>, vector<1x100x64xbf16>
    %2 = vector.shape_cast %1 : vector<1x100x64xbf16> to vector<100x64xbf16>
    %cst = arith.constant dense<0.000000e+00> : vector<8x64xf32>
    %3 = tpu.matmul %0, %2, %cst {dimension_numbers = #tpu.dot_dimension_numbers<[1], [0], [0], [1], [0, 0, 1, 1], [], []>} : vector<8x100xbf16>, vector<100x64xbf16>, vector<8x64xf32> -> vector<8x64xf32>
    %c0_4 = arith.constant 0 : index
    %c0_5 = arith.constant 0 : index
    %4 = vector.load %arg4[%c0_4, %c0_5] : memref<8x1xf32, #tpu.memory_space<vmem>>, vector<8x1xf32>
    %5 = vector.broadcast %4 : vector<8x1xf32> to vector<8x64xf32>
    %6 = arith.addf %3, %5 : vector<8x64xf32>
    %cst_6 = arith.constant 0.000000e+00 : f32
    %7 = vector.broadcast %cst_6 : f32 to vector<8x64xf32>
    %8 = arith.cmpf ogt, %6, %7 : vector<8x64xf32>
    %cst_7 = arith.constant 0.00999999977 : f32
    %9 = vector.broadcast %cst_7 : f32 to vector<8x64xf32>
    %10 = arith.mulf %9, %6 : vector<8x64xf32>
    %11 = arith.select %8, %6, %10 : vector<8x64xi1>, vector<8x64xf32>
    %c0_8 = arith.constant 0 : index
    %c0_9 = arith.constant 0 : index
    %c0_10 = arith.constant 0 : index
    %12 = vector.load %arg5[%c0_8, %c0_9, %c0_10] : memref<1x8x64xf32, #tpu.memory_space<vmem>>, vector<1x8x64xf32>
    %13 = vector.shape_cast %12 : vector<1x8x64xf32> to vector<8x64xf32>
    %14 = vector.shape_cast %11 : vector<8x64xf32> to vector<1x8x64xf32>
    tpu.vector_store %arg5[%c0_8, %c0_9, %c0_10], %14 {strides = array<i32>} : memref<1x8x64xf32, #tpu.memory_space<vmem>>, vector<1x8x64xf32>,
    return
  }
  func.func @transform_0(%arg0: i32, %arg1: i32) -> (i32, i32, i32) {
    %c0_i32 = arith.constant 0 : i32
    %c0_i32_0 = arith.constant 0 : i32
    return %arg0, %c0_i32, %arg1 : i32, i32, i32
  }
  func.func @transform_1(%arg0: i32, %arg1: i32) -> (i32, i32) {
    %c0_i32 = arith.constant 0 : i32
    %c0_i32_0 = arith.constant 0 : i32
    %c0_i32_1 = arith.constant 0 : i32
    return %c0_i32, %c0_i32_0 : i32, i32
  }
  func.func @transform_2(%arg0: i32, %arg1: i32) -> (i32, i32) {
    %c0_i32 = arith.constant 0 : i32
    %c0_i32_0 = arith.constant 0 : i32
    %c0_i32_1 = arith.constant 0 : i32
    return %c0_i32, %c0_i32_0 : i32, i32
  }
  func.func @transform_3(%arg0: i32, %arg1: i32) -> (i32, i32, i32) {
    %c0_i32 = arith.constant 0 : i32
    %c0_i32_0 = arith.constant 0 : i32
    return %arg0, %c0_i32, %arg1 : i32, i32, i32
  }
}

</mosaic_0001>

<bundles_post_ra>
// kernel: tpu_custom_call.1
= control target key start
LH: loop header
LB: loop body
LE: loop exit
PB: predicated region body
PF: predicated region fallthrough
CT: control target
= control target key end

     0   :  { %8 = vsyncpa [#allocation3], 0  ;;  %s730_s0 = inlined_call_operand.vmem [shape: bf16[2,100,64], index: 0, kind: input, shape index: {}]   ;;  %s731_s1 = inlined_call_operand.vmem [shape: bf16[8,100], index: 1, kind: input, shape index: {}]   ;;  %s732_s2 = inlined_call_operand.vmem [shape: f32[8,1], index: 2, kind: input, shape index: {}]   ;;  %s733_s3 = inlined_call_operand.hbm [shape: f32[2,8,64], index: 3, kind: output, shape index: {}]  }
   0x1   :  { %10 = vsyncpa [#allocation3 + $0x1], 0  ;;  %s612_s12 = smov 0   ;;  %s614_s13 = smov 0  }
   0x2   :  { %s616_s14 = smov 0   ;;  %s618_s15 = smov 0  }
   0x3   :  { %s620_s16 = smov 0   ;;  %s622_s17 = smov 0  }
   0x4 LB: > { %s396_s18 = sadd.s32 4294967295, %s586_s17   ;;  %s397_s19 = sadd.s32 4294967294, %s586_s17   ;;  %s586_s17 = sphi %s622_s17, %s16_s17   ;;  %s582_s16 = sphi %s620_s16, %s740_s16   ;;  %s578_s15 = sphi %s618_s15, %s739_s15   ;;  %s574_s14 = sphi %s616_s14, %s738_s14   ;;  %s570_s13 = sphi %s614_s13, %s737_s13   ;;  %s566_s12 = sphi %s612_s12, %s736_s12  }
   0x5   : > { %s28_s20 = sadd.s32 1, %s582_s16  ;;  %s107_s21 = sadd.s32 1, %s574_s14 }
   0x6   : > { %p30_p0 = scmp.ge.s32.totalorder %s28_s20, 2  ;;  %p117_p1 = scmp.ne.s32.totalorder %s574_s14, %s570_s13 }
   0x7   : > { %p118_p2 = scmp.eq.s32.totalorder %s396_s18, 1  ;;  %p123_p3 = scmp.ne.s32.totalorder %s570_s13, %s566_s12 }
   0x8   : > { %s742_s20 = smov (%p30_p0, %s28_s20), 0  ;;  %p124_p5 = scmp.eq.s32.totalorder %s397_s19, 1 }
   0x9   : > { %p652_p4 = por %p118_p2, %p117_p1  ;;  %s102_s23 = ssub.s32 %s582_s16, %s742_s20 }
   0xa   : > { %p400_p6 = scmp.ge.s32.totalorder %s586_s17, 1  ;;  %p105_p7 = scmp.eq.s32.totalorder %s102_s23, 0 }
   0xb   : > { %p659_p8 = por %p124_p5, %p123_p3  ;;  %p159_p9 = scmp.lt.s32.totalorder %s586_s17, 3 }
   0xc   : > { %s665_s25 = scalar_select %p105_p7, %s574_s14, %s107_s21  }
   0xd   : > { %p160_p10 = pnand %p400_p6, %p159_p9 }
   0xe   : > { %p186_p11 = scmp.lt.s32.totalorder (!%p160_p10), %s578_s15, 1  ;;  %v588_v0 = vmov (!%p160_p10), 0.0   ;;  %vm589_vm0 = vmmov (!%p160_p10), 0   ;;  %v209_v1 = vld [vmem:[%s732_s2] sm:$0xff] (!%p160_p10)  ;;  %v590_v2 = vmov (!%p160_p10), 0   ;;  %vm258_vm1 = vcmask (!%p160_p10), 1041408  }
   0xf   : > { %163 = sbr.rel (%p160_p10) target bundleno = 286 (0x11e), region = 32  ;;  %423 = vmatprep.subr.bf16.mxu0 (!%p160_p10), %v588_v0  ;;  %437 = vmatprep.mubr.msk.bf16.mxu0 (!%p160_p10), %vm589_vm0, %v588_v0  ;;  %v195_v11 = vld [vmem:[%s731_s1] sm:$0xf] (!%p160_p10)  ;;  %vm254_vm2 = vcmask (!%p160_p10), 818176   ;;  %s183_s8 = sand.u32 (!%p160_p10), 1, %s570_s13   ;;  %vm305_vm4 = vcmask (!%p160_p10), 523264  }
  0x10   : > { %500 = vset.pattern.permute.xlu0 (!%p160_p10), %v590_v2  ;;  %s401_s9 = sshll.u32 (!%p160_p10), %s183_s8, 3  ;;  %s412_s10 = sshll.u32 (!%p160_p10), %s578_s15, 7 }
  0x11   : > { %212 = vperm.xlu0 (!%p160_p10), %500, %v209_v1   ;;  %s185_s11 = scalar_lea.vmem (!%p160_p10), [#allocation2], %s401_s9  ;;  %s683_s23 = scalar_lea.hbm (!%p160_p10), %s733_s3, %s412_s10 }
  0x12   : > { %s322_s18 = sshll.u32 (!%p160_p10), %s185_s11, 4  ;;  %s591_s27 = smov (!%p160_p10), [#allocation2]   ;;  %s685_s18 = int_to_ptr.vmem [resolvable:$true] %s322_s18 }
  0x13   : > { %s508_s26 = scalar_lea.vmem (!%p160_p10), %s685_s18, 128 }
  0x14   : > { %p509_p12 = scmp.ne.s32.totalorder (!%p160_p10), %s685_s18, %s508_s26 }
  0x16   : > { %s187_s28 = scalar_select %p186_p11, %s578_s15, 1 }
  0x17   : > { %s308_s15 = scalar_lea.sflag [#allocation3], %s183_s8  ;;  %p510_p13 = pnand %p509_p12, %p652_p4 }
  0x18   : > { %s441_s29 = smul.u32 52, %s187_s28  ;;  %s512_s28 = sshll.u32 %s591_s27, 4  ;;  %s513_s28 = int_to_ptr.vmem [resolvable:$false] %s512_s28 }
  0x19   : > { %p511_p0 = pneg %p510_p13  ;;  %p515_p1 = scmp.lt.s32.totalorder %s685_s18, %s513_s28 }
  0x1a   : > { %s193_s5 = scalar_lea.vmem %s730_s0, %s441_s29  ;;  %s514_s29 = scalar_lea.vmem %s513_s28, 256 }
  0x1b   : > { %v501_v3 = vld [vmem:[%s193_s5] sm:$0xff]   ;;  %v502_v4 = vld [vmem:[%s193_s5 + $0x8] sm:$0xff]   ;;  %v503_v5 = vld [vmem:[%s193_s5 + $0x10] sm:$0xff]   ;;  %p516_p2 = scmp.lt.s32.totalorder %s514_s29, %s508_s26 }
  0x1c   : > { %424 = vmatpush3.bf16.msra.mxu0 %v501_v3  ;;  %v504_v6 = vld [vmem:[%s193_s5 + $0x18] sm:$0xff]   ;;  %v505_v7 = vld [vmem:[%s193_s5 + $0x20] sm:$0xff]   ;;  %v506_v8 = vld [vmem:[%s193_s5 + $0x28] sm:$0xff]  }
  0x1d   : > { %425 = vmatprep.subr.bf16.mxu0 %v588_v0  ;;  %v507_v9 = vld [vmem:[%s193_s5 + $0x30] ss:$0 sps:$4 sm:$0x33]   ;;  %p517_p3 = por %p516_p2, %p515_p1 }
  0x1e   : > { %v260_v10 = vsel %vm258_vm1, %v507_v9, 0 }
  0x1f   : > { %p518_p5 = pnand %p517_p3, %p511_p0 }
  0x20   : > { %426 = vmatpush3.bf16.msra.mxu0 %v502_v4 }
  0x21   : > { %427 = vmatprep.subr.bf16.mxu0 %v588_v0 }
  0x24   : > { %428 = vmatpush3.bf16.msra.mxu0 %v503_v5 }
  0x25   : > { %429 = vmatprep.subr.bf16.mxu0 %v588_v0 }
  0x28   : > { %430 = vmatpush3.bf16.msra.mxu0 %v504_v6 }
  0x29   : > { %431 = vmatprep.subr.bf16.mxu0 %v588_v0 }
  0x2c   : > { %432 = vmatpush3.bf16.msra.mxu0 %v505_v7 }
  0x2d   : > { %433 = vmatprep.subr.bf16.mxu0 %v588_v0 }
  0x30   : > { %434 = vmatpush3.bf16.msra.mxu0 %v506_v8 }
  0x31   : > { %435 = vmatprep.subr.bf16.mxu0 %v588_v0 }
  0x34   : > { %436 = vmatpush3.bf16.msra.mxu0 %v260_v10 }
  0x37   : > { %438 = vmatmul.mubr.msk.bf16.vlgmr.msra.gmra.mrb[0].mxu0 %vm254_vm2, %v195_v11 }
  0x90   : > { %v213_v12 = vpop.permute.xlu0 %212 }
 0x10a   : > { %v296_v13 = vpop.f32.mrb[0].mxu0 }
 0x10b   : > { %v297_v14 = vadd.f32 %v296_v13, %v213_v12  ;;  %v439_v15 = vpop.f32.mrb[1].mxu0 }
 0x10c   : > { %v299_v16 = vpop.f32.mrb[2].mxu0 }
 0x10d   : > { %vm302_vm3 = vcmp.gt.f32.partialorder %v297_v14, 0.0  ;;  %v303_v17 = vmul.f32 0.01, %v297_v14  ;;  %v440_v18 = vpop.f32.mrb[3].mxu0 }
 0x10f   : > { %v304_v19 = vsel %vm302_vm3, %v297_v14, %v303_v17 }
 0x110   : > { %306 = vst.msk [vmem:[%s185_s11] sm:$0xff] %vm305_vm4, %v304_v19 }
 0x111   : > { %521 = shalt.err (!%p518_p5)
}
 0x112   : > { %s522_s30 = scalar_lea.hbm %s683_s23, 128  ;;  %s526_s6 = scalar_lea.hbm %s733_s3, 256 }
 0x113   : > { %p523_p6 = scmp.ne.s32.totalorder %s683_s23, %s522_s30  ;;  %p527_p10 = scmp.lt.u32.totalorder %s683_s23, %s733_s3 }
 0x114   : > { %p528_p11 = scmp.lt.u32.totalorder %s526_s6, %s522_s30  ;;  %p530_p13 = scmp.lt.u32.totalorder %s522_s30, %s683_s23 }
 0x115   : > { %p524_p7 = pnand %p523_p6, %p652_p4 }
 0x116   : > { %p529_p12 = por %p528_p11, %p527_p10 }
 0x117   : > { %p525_p9 = pneg %p524_p7 }
 0x118   : > { %p531_p0 = por %p530_p13, %p529_p12 }
 0x11a   : > { %p532_p1 = pnand %p531_p0, %p525_p9 }
 0x11c   : > { %535 = shalt.err (!%p532_p1)
}
 0x11d   : > { %442 = dma.vmem_to_hbm [thread:$0]  (%p652_p4), %s685_s18, 128, %s683_s23, %s308_s15  }
 0x11e PF: > { %p448_p2 = scmp.ge.s32.totalorder %s586_s17, 2  ;;  %s334_s9 = sand.u32 1, %s566_s12  }
 0x11f   : > { %s335_s10 = scalar_lea.sflag [#allocation3], %s334_s9 }
 0x120   : > { %p445_p3 = pnand %p448_p2, %p659_p8 }
 0x122   : > { %561 = dma.done.wait (!%p445_p3), %s335_s10, 128  }
 0x123   : > { %563 = vsyncadd (!%p445_p3), %s335_s10, 4294967168  ;;  %s16_s17 = sadd.s32 1, %s586_s17   ;;  %s736_s12 = smov %s570_s13 }
 0x124   : > { %p13_p5 = scmp.ge.s32.totalorder %s16_s17, 4   ;;  %s737_s13 = smov %s574_s14 }
 0x125   : > { %s738_s14 = smov %s665_s25  ;;  %s739_s15 = smov %s582_s16 }
 0x126   : > { %s740_s16 = smov %s742_s20  ;;  %15 = sbr.rel (!%p13_p5) target bundleno = 4 (0x4), region = 67 }
 0x12d   :  { %340 = vsyncpa [#allocation3], 1 }
 0x12e   :  { %342 = vsyncpa [#allocation3 + $0x1], 1 }

</bundles_post_ra>
